<compile_context>
chip_gen: v7x
topology: tpu7x:2x2x1
jax: 0.10.0
libtpu: 0.0.40
codegen_flags: <defaults>
</compile_context>

<pallas_src>
import functools

import jax
import jax.numpy as jnp
from jax.experimental import pallas as pl
from jax.experimental.pallas import tpu as pltpu

NEG_SLOPE = 0.01   # torch.nn.LeakyReLU default negative_slope
BN_EPS = 1e-5      # torch.nn.BatchNorm1d default eps


def _round_up(x, m):
    return ((x + m - 1) // m) * m


def _fcnn_kernel(layout, x_ref, theta_ref, out_ref):
    """One batch tile: (Linear + folded-BN + LeakyReLU) * H, last Linear, non_linearity.

    `theta_ref` is a single packed (rows, C) f32 param slab; every slice below uses
    static Python ints and 8-aligned row offsets.
    """
    out = x_ref[...].astype(jnp.float32)

    for w_off, b_off, in_f, out_f in layout["hidden"]:
        w = theta_ref[w_off:w_off + in_f, 0:out_f]
        b = theta_ref[b_off:b_off + 1, 0:out_f]
        out = jnp.dot(out, w, preferred_element_type=jnp.float32) + b
        out = jnp.maximum(out, NEG_SLOPE * out)           # LeakyReLU
        # TODO(synk): nn.Dropout is identity in eval mode; not applied here.

    w_off, in_f = layout["last"]
    t_off = layout["tail"]
    od = layout["out_dim"]
    w_last = theta_ref[w_off:w_off + in_f, 0:od]          # /10 folded in
    b_last = theta_ref[t_off + 0:t_off + 1, 0:od]         # /10 folded in
    vmin = theta_ref[t_off + 1:t_off + 2, 0:od]
    delta = theta_ref[t_off + 2:t_off + 3, 0:od]          # vmax - vmin

    # non_linearity: gamma = vmin + (vmax - vmin) * sigmoid(U / 10); sigmoid -> EUP slot.
    u = jnp.dot(out, w_last, preferred_element_type=jnp.float32) + b_last
    out_ref[...] = (vmin + delta * jax.nn.sigmoid(u)).astype(out_ref.dtype)


def prepare_params(params, *, dim, num_nodes, num_layers):
    """One-time param prep: fold eval-mode BN and the /10 into the weights, then pack
    everything into a single f32 slab with 8-row-aligned, statically-known offsets."""
    num_hidden = num_layers - 1
    out_dim = dim[-1] * num_nodes
    C = max([dim[l + 1] for l in range(num_hidden)] + [out_dim])

    blocks = []
    row = 0

    def add(arr):
        nonlocal row
        r, c = arr.shape
        rp = _round_up(max(r, 1), 8)
        blocks.append(jnp.pad(arr.astype(jnp.float32), ((0, rp - r), (0, C - c))))
        off = row
        row += rp
        return off

    layout = {"hidden": [], "out_dim": out_dim}
    for layer in range(num_hidden):
        w, b, bn_gamma, bn_beta, bn_mean, bn_var = params["hidden"][layer]
        scale = bn_gamma / jnp.sqrt(bn_var + BN_EPS)
        w_f = w * scale[None, :]                              # W' = W * scale
        b_f = ((b - bn_mean) * scale + bn_beta).reshape(1, -1)  # b' = (b-mean)*scale+beta
        w_off = add(w_f)
        b_off = add(b_f)
        layout["hidden"].append((w_off, b_off, int(w.shape[0]), int(w.shape[1])))

    w_last, b_last = params["last"]
    layout["last"] = (add(w_last / 10.0), int(w_last.shape[0]))
    # NOTE: vmin/vmax flatten as (num_nodes, dim[-1]) row-major, matching the torch
    # reshape out.reshape(-1, num_nodes, dim[-1]) of the last Linear's flat output.
    tail = jnp.stack([
        (b_last / 10.0).reshape(out_dim),
        params["vmin"].reshape(out_dim),
        (params["vmax"] - params["vmin"]).reshape(out_dim),
    ], axis=0)
    layout["tail"] = add(tail)

    theta = jnp.concatenate(blocks, axis=0)
    return {"theta": theta, "layout": layout,
            "in_dim": dim[0] * num_nodes, "out_dim": out_dim}


def _pick_batch_tile(B, block_b):
    """Pick (tb, b_pad): tb divides b_pad; tb is a multiple of 8 or equals B.

    Policy: biggest tile <= block_b, keeping an even >=2-step grid when the batch
    allows it (v7x megacore sharding, DMA/compute overlap on 1-TC chips) and
    avoiding wrapper-side padding whenever a divisor of B exists.
    """
    block_b = max(8, _round_up(block_b, 8))
    if B <= block_b:
        if B >= 16 and B % 16 == 0:
            return B // 2, B        # two equal tiles, no padding
        return B, B                 # single full-array tile (block dim == array dim)
    b_pad = _round_up(B, 8)
    tb = min(block_b, b_pad)
    while tb > 8 and b_pad % tb != 0:
        tb -= 8
    return tb, b_pad


def fcnn_unsupervised_forward(x, prep, *, dim, num_nodes, block_b=2048):
    B = x.shape[0]
    in_dim = prep["in_dim"]
    out_dim = prep["out_dim"]
    theta = prep["theta"]
    layout = prep["layout"]

    x_flat = x.reshape(B, in_dim).astype(jnp.float32)

    tb, b_pad = _pick_batch_tile(B, block_b)
    if b_pad != B:   # only for ragged B (not a multiple of 8)
        x_flat = jnp.pad(x_flat, ((0, b_pad - B), (0, 0)))
    grid = (b_pad // tb,)

    kernel = functools.partial(_fcnn_kernel, layout)

    out_flat = pl.pallas_call(
        kernel,
        out_shape=jax.ShapeDtypeStruct((b_pad, out_dim), jnp.float32),
        grid=grid,
        in_specs=[
            pl.BlockSpec((tb, in_dim), lambda i: (i, 0)),     # pipelined batch tile
            pl.BlockSpec(theta.shape, lambda i: (0, 0)),      # VMEM-resident params
        ],
        out_specs=pl.BlockSpec((tb, out_dim), lambda i: (i, 0)),  # true lane width
        compiler_params=pltpu.CompilerParams(
            dimension_semantics=("parallel",)),
    )(x_flat, theta)

    if b_pad != B:
        out_flat = out_flat[:B]
    return out_flat.reshape(B, num_nodes, dim[-1])


def reference_forward(x, params, *, dim, num_nodes, num_layers):
    """Pure-JAX reference reproducing the PyTorch forward (eval mode)."""
    B = x.shape[0]
    out = x.reshape(B, dim[0] * num_nodes)
    for layer in range(num_layers - 1):
        w, b, bn_gamma, bn_beta, bn_mean, bn_var = params["hidden"][layer]
        out = out @ w + b
        out = (out - bn_mean) / jnp.sqrt(bn_var + BN_EPS) * bn_gamma + bn_beta
        out = jnp.where(out >= 0, out, NEG_SLOPE * out)
    w_last, b_last = params["last"]
    out = out @ w_last + b_last
    out = out.reshape(B, num_nodes, dim[-1])
    a = params["vmin"][None]
    b_ = params["vmax"][None]
    return a + (b_ - a) * jax.nn.sigmoid(out / 10.0)


def init_params(key, *, dim, num_nodes, num_layers):
    params = {"hidden": []}
    keys = jax.random.split(key, 4 * num_layers + 4)
    ki = 0
    for layer in range(num_layers - 1):
        in_f = dim[layer] * num_nodes if layer == 0 else dim[layer]
        out_f = dim[layer + 1]
        bound = 1.0 / jnp.sqrt(in_f)
        w = jax.random.uniform(keys[ki], (in_f, out_f), jnp.float32, -bound, bound); ki += 1
        b = jax.random.uniform(keys[ki], (out_f,), jnp.float32, -bound, bound); ki += 1
        bn_gamma = 1.0 + 0.1 * jax.random.normal(keys[ki], (out_f,), jnp.float32); ki += 1
        bn_beta = 0.1 * jax.random.normal(keys[ki], (out_f,), jnp.float32); ki += 1
        bn_mean = jnp.zeros((out_f,), jnp.float32)
        bn_var = jnp.ones((out_f,), jnp.float32)
        params["hidden"].append((w, b, bn_gamma, bn_beta, bn_mean, bn_var))

    in_f = dim[num_layers - 1]
    out_f = dim[-1] * num_nodes
    bound = 1.0 / jnp.sqrt(in_f)
    w_last = jax.random.uniform(keys[ki], (in_f, out_f), jnp.float32, -bound, bound); ki += 1
    b_last = jax.random.uniform(keys[ki], (out_f,), jnp.float32, -bound, bound); ki += 1
    params["last"] = (w_last, b_last)

    vmin = jax.random.normal(keys[ki], (num_nodes, dim[-1]), jnp.float32); ki += 1
    vmax = vmin + jnp.abs(jax.random.normal(keys[ki], (num_nodes, dim[-1]), jnp.float32)) + 0.1
    params["vmin"] = vmin
    params["vmax"] = vmax
    return params


if __name__ == "__main__":
    key = jax.random.PRNGKey(0)
    kp, kx, kx2 = jax.random.split(key, 3)

    num_nodes = 8
    num_layers = 3
    dim = [2, 32, 32, 3]  # dim[0]=per-node input feats, dim[-1]=per-node outputs (Qgen, V, angle)

    params = init_params(kp, dim=dim, num_nodes=num_nodes, num_layers=num_layers)
    prep = prepare_params(params, dim=dim, num_nodes=num_nodes, num_layers=num_layers)

    # Small test (B=2): single full-array tile, unpadded 24-lane output, no wrapper pad/slice.
    B = 2
    x = jax.random.normal(kx, (B, num_nodes, dim[0]), jnp.float32)
    out = jax.block_until_ready(
        fcnn_unsupervised_forward(x, prep, dim=dim, num_nodes=num_nodes))
    ref = reference_forward(x, params, dim=dim, num_nodes=num_nodes, num_layers=num_layers)
    assert out.shape == (B, num_nodes, dim[-1]), out.shape
    assert jnp.allclose(out, ref, atol=1e-4, rtol=1e-4), float(jnp.max(jnp.abs(out - ref)))

    # Larger batch: exercises the pipelined 2-step batch grid (2 x 512-row tiles),
    # still with no wrapper-side padding or output slicing.
    B2 = 1024
    x2 = jax.random.normal(kx2, (B2, num_nodes, dim[0]), jnp.float32)
    out2 = jax.block_until_ready(
        fcnn_unsupervised_forward(x2, prep, dim=dim, num_nodes=num_nodes))
    ref2 = reference_forward(x2, params, dim=dim, num_nodes=num_nodes, num_layers=num_layers)
    assert out2.shape == (B2, num_nodes, dim[-1]), out2.shape
    assert jnp.allclose(out2, ref2, atol=1e-4, rtol=1e-4), float(jnp.max(jnp.abs(out2 - ref2)))

    print("KERNEL_OK")
</pallas_src>

<mosaic_0001>
module attributes {stable_mosaic.version = 11 : i64} {
  func.func @_fcnn_kernel(%arg0: i32, %arg1: memref<2x16xf32, #tpu.memory_space<vmem>>, %arg2: memref<104x32xf32, #tpu.memory_space<vmem>>, %arg3: memref<2x24xf32, #tpu.memory_space<vmem>>) attributes {dimension_semantics = [#tpu.dimension_semantics<parallel>], iteration_bounds = array<i64: 1>, scalar_prefetch = 0 : i64, scratch_operands = 0 : i64, tpu.core_type = #tpu.core_type<tc>, window_params = [{transform_indices = @transform_0, window_bounds = array<i64: 2, 16>}, {pipeline_mode = #tpu.pipeline_mode<synchronous>, transform_indices = @transform_1, window_bounds = array<i64: 104, 32>}, {transform_indices = @transform_2, window_bounds = array<i64: 2, 24>}]} {
    %c0 = arith.constant 0 : index
    %c0_0 = arith.constant 0 : index
    %0 = vector.load %arg1[%c0, %c0_0] : memref<2x16xf32, #tpu.memory_space<vmem>>, vector<2x16xf32>
    %c0_1 = arith.constant 0 : index
    %c0_2 = arith.constant 0 : index
    %1 = vector.load %arg2[%c0_1, %c0_2] : memref<104x32xf32, #tpu.memory_space<vmem>>, vector<16x32xf32>
    %c16 = arith.constant 16 : index
    %c0_3 = arith.constant 0 : index
    %2 = vector.load %arg2[%c16, %c0_3] : memref<104x32xf32, #tpu.memory_space<vmem>>, vector<1x32xf32>
    %cst = arith.constant dense<0.000000e+00> : vector<2x32xf32>
    %3 = tpu.matmul %0, %1, %cst {dimension_numbers = #tpu.dot_dimension_numbers<[1], [0], [0], [1], [0, 0, 1, 1], [], []>} : vector<2x16xf32>, vector<16x32xf32>, vector<2x32xf32> -> vector<2x32xf32>
    %4 = vector.broadcast %2 : vector<1x32xf32> to vector<2x32xf32>
    %5 = arith.addf %3, %4 : vector<2x32xf32>
    %cst_4 = arith.constant 0.00999999977 : f32
    %6 = vector.broadcast %cst_4 : f32 to vector<2x32xf32>
    %7 = arith.mulf %6, %5 : vector<2x32xf32>
    %8 = arith.maximumf %5, %7 : vector<2x32xf32>
    %c24 = arith.constant 24 : index
    %c0_5 = arith.constant 0 : index
    %9 = vector.load %arg2[%c24, %c0_5] : memref<104x32xf32, #tpu.memory_space<vmem>>, vector<32x32xf32>
    %c56 = arith.constant 56 : index
    %c0_6 = arith.constant 0 : index
    %10 = vector.load %arg2[%c56, %c0_6] : memref<104x32xf32, #tpu.memory_space<vmem>>, vector<1x32xf32>
    %cst_7 = arith.constant dense<0.000000e+00> : vector<2x32xf32>
    %11 = tpu.matmul %8, %9, %cst_7 {dimension_numbers = #tpu.dot_dimension_numbers<[1], [0], [0], [1], [0, 0, 1, 1], [], []>} : vector<2x32xf32>, vector<32x32xf32>, vector<2x32xf32> -> vector<2x32xf32>
    %12 = vector.broadcast %10 : vector<1x32xf32> to vector<2x32xf32>
    %13 = arith.addf %11, %12 : vector<2x32xf32>
    %cst_8 = arith.constant 0.00999999977 : f32
    %14 = vector.broadcast %cst_8 : f32 to vector<2x32xf32>
    %15 = arith.mulf %14, %13 : vector<2x32xf32>
    %16 = arith.maximumf %13, %15 : vector<2x32xf32>
    %c64 = arith.constant 64 : index
    %c0_9 = arith.constant 0 : index
    %17 = vector.load %arg2[%c64, %c0_9] : memref<104x32xf32, #tpu.memory_space<vmem>>, vector<32x24xf32>
    %c96 = arith.constant 96 : index
    %c0_10 = arith.constant 0 : index
    %18 = vector.load %arg2[%c96, %c0_10] : memref<104x32xf32, #tpu.memory_space<vmem>>, vector<1x24xf32>
    %c97 = arith.constant 97 : index
    %c0_11 = arith.constant 0 : index
    %19 = vector.load %arg2[%c97, %c0_11] : memref<104x32xf32, #tpu.memory_space<vmem>>, vector<1x24xf32>
    %c98 = arith.constant 98 : index
    %c0_12 = arith.constant 0 : index
    %20 = vector.load %arg2[%c98, %c0_12] : memref<104x32xf32, #tpu.memory_space<vmem>>, vector<1x24xf32>
    %cst_13 = arith.constant dense<0.000000e+00> : vector<2x24xf32>
    %21 = tpu.matmul %16, %17, %cst_13 {dimension_numbers = #tpu.dot_dimension_numbers<[1], [0], [0], [1], [0, 0, 1, 1], [], []>} : vector<2x32xf32>, vector<32x24xf32>, vector<2x24xf32> -> vector<2x24xf32>
    %22 = vector.broadcast %18 : vector<1x24xf32> to vector<2x24xf32>
    %23 = arith.addf %21, %22 : vector<2x24xf32>
    %24 = arith.negf %23 : vector<2x24xf32>
    %25 = math.exp %24 : vector<2x24xf32>
    %cst_14 = arith.constant 1.000000e+00 : f32
    %26 = vector.broadcast %cst_14 : f32 to vector<2x24xf32>
    %27 = arith.addf %26, %25 : vector<2x24xf32>
    %28 = arith.divf %26, %27 : vector<2x24xf32>
    %29 = vector.broadcast %20 : vector<1x24xf32> to vector<2x24xf32>
    %30 = arith.mulf %29, %28 : vector<2x24xf32>
    %31 = vector.broadcast %19 : vector<1x24xf32> to vector<2x24xf32>
    %32 = arith.addf %31, %30 : vector<2x24xf32>
    %c0_15 = arith.constant 0 : index
    %c0_16 = arith.constant 0 : index
    %33 = vector.load %arg3[%c0_15, %c0_16] : memref<2x24xf32, #tpu.memory_space<vmem>>, vector<2x24xf32>
    tpu.vector_store %arg3[%c0_15, %c0_16], %32 {strides = array<i32>} : memref<2x24xf32, #tpu.memory_space<vmem>>, vector<2x24xf32>,
    return
  }
  func.func @transform_0(%arg0: i32) -> (i32, i32) {
    %c0_i32 = arith.constant 0 : i32
    %c0_i32_0 = arith.constant 0 : i32
    return %arg0, %c0_i32 : i32, i32
  }
  func.func @transform_1(%arg0: i32) -> (i32, i32) {
    %c0_i32 = arith.constant 0 : i32
    %c0_i32_0 = arith.constant 0 : i32
    %c0_i32_1 = arith.constant 0 : i32
    return %c0_i32, %c0_i32_0 : i32, i32
  }
  func.func @transform_2(%arg0: i32) -> (i32, i32) {
    %c0_i32 = arith.constant 0 : i32
    %c0_i32_0 = arith.constant 0 : i32
    return %arg0, %c0_i32 : i32, i32
  }
}

</mosaic_0001>

<bundles_post_ra>
// kernel: tpu_custom_call.1
= control target key start
LH: loop header
LB: loop body
LE: loop exit
PB: predicated region body
PF: predicated region fallthrough
CT: control target
= control target key end

     0   :  { %v395_v2 = vmov 0.0|0.0   ;;  %vm396_vm0 = vmmov 0   ;;  %v397_v4 = vmov 0.0   ;;  %s476_s0 = inlined_call_operand.vmem [shape: f32[2,16], index: 0, kind: input, shape index: {}]   ;;  %s477_s1 = inlined_call_operand.vmem [shape: f32[104,32], index: 1, kind: input, shape index: {}]   ;;  %s478_s2 = inlined_call_operand.hbm [shape: f32[2,24], index: 2, kind: output, shape index: {}]  }
   0x1   :  { %v13_v0 = vld [vmem:[%s477_s1] sm:$0xff]  ;;  %v14_v1 = vld [vmem:[%s477_s1 + $0x8] sm:$0xff]  ;;  %348 = vmatprep.subr.bf16.mxu0 %v395_v2  ;;  %323 = vmatprep.mubr.msk.f32.mxu0 %vm396_vm0, %v397_v4 }
   0x2   :  { %v349_v3 = vpack.c.bf16 %v14_v1, %v13_v0 }
   0x3   :  { %7 = vsyncpa [#allocation3], 0  ;;  %351 = vmatprep.subr.bf16.mxu1 %v395_v2  ;;  %334 = vmatprep.mubr.msk.f32.mxu1 %vm396_vm0, %v397_v4  ;;  %v12_v5 = vld [vmem:[%s476_s0] sm:$0x3]  ;;  %vm20_vm1 = vcmask 130048   ;;  %v96_v6 = vld [vmem:[%s477_s1 + $0x18] sm:$0xff] }
   0x4   :  { %350 = vmatpush3.bf16.msra.mxu0 %v349_v3  ;;  %v97_v7 = vld [vmem:[%s477_s1 + $0x20] sm:$0xff]  ;;  %v98_v9 = vld [vmem:[%s477_s1 + $0x28] sm:$0xff]  ;;  %v99_v10 = vld [vmem:[%s477_s1 + $0x30] sm:$0xff]  ;;  %vm105_vm2 = vcmask 261120   ;;  %s398_s12 = smov [#allocation2]   ;;  %vm281_vm3 = vcmask 189440  }
   0x5   :  { %357 = vmatprep.subr.bf16.mxu0 %v395_v2  ;;  %v352_v8 = vpack.c.bf16 %v97_v7, %v96_v6  ;;  %v355_v11 = vpack.c.bf16 %v99_v10, %v98_v9  ;;  %v297_v12 = vld [vmem:[%s477_s1 + $0x10] ss:$0 sm:$0xff]  ;;  %v181_v18 = vld [vmem:[%s477_s1 + $0x40] sm:$0xff]  ;;  %v182_v19 = vld [vmem:[%s477_s1 + $0x48] sm:$0xff]  ;;  %s289_s13 = sshll.u32 %s398_s12, 4  ;;  %s290_s13 = int_to_ptr.vmem [resolvable:$true] %s289_s13 }
   0x6   :  { %v358_v20 = vpack.c.bf16 %v182_v19, %v181_v18  ;;  %v183_v21 = vld [vmem:[%s477_s1 + $0x50] sm:$0xff]  ;;  %v184_v22 = vld [vmem:[%s477_s1 + $0x58] sm:$0xff]  ;;  %v301_v30 = vld [vmem:[%s477_s1 + $0x60] ss:$0 sm:$0xff]  ;;  %s371_s14 = scalar_lea.vmem %s290_s13, 32  ;;  %p376_p1 = scmp.lt.s32.totalorder %s290_s13, %s290_s13 }
   0x7   :  { %324 = vmatmul.mubr.msk.f32.vlgmr.msra.gmra.mrb[0].mxu0 %vm20_vm1, %v12_v5  ;;  %353 = vmatpush3.bf16.msra.mxu1 %v352_v8  ;;  %v361_v23 = vpack.c.bf16 %v184_v22, %v183_v21  ;;  %v299_v24 = vld [vmem:[%s477_s1 + $0x38] ss:$0 sm:$0xff]  ;;  %v304_v37 = vld [vmem:[%s477_s1 + $0x62] ss:$0 sm:$0xff]  ;;  %v305_v39 = vld [vmem:[%s477_s1 + $0x61] ss:$0 sm:$0xff]  ;;  %p372_p0 = scmp.ne.s32.totalorder %s290_s13, %s371_s14  ;;  %p377_p2 = scmp.lt.s32.totalorder %s371_s14, %s371_s14 }
   0x8   :  { %345 = vmatprep.mubr.msk.f32.mxu0 %vm396_vm0, %v397_v4  ;;  %354 = vmatprep.subr.bf16.mxu1 %v395_v2 }
   0x9   :  { %359 = vmatpush3.bf16.msra.mxu0 %v358_v20  ;;  %p378_p3 = por %p377_p2, %p376_p1 }
   0xa   :  { %360 = vmatprep.subr.bf16.mxu0 %v395_v2 }
   0xb   :  { %356 = vmatpush3.bf16.msra.mxu1 %v355_v11  ;;  %p379_p4 = pnand %p378_p3, %p372_p0 }
   0xd   :  { %362 = vmatpush3.bf16.msra.mxu0 %v361_v23 }
  0xda   :  { %v90_v13 = vpop.f32.mrb[0].mxu0 }
  0xdb   :  { %v91_v14 = vadd.f32 %v297_v12, %v90_v13  ;;  %v325_v15 = vpop.f32.mrb[1].mxu0 }
  0xdd   :  { %v94_v16 = vmul.f32 0.01, %v91_v14 }
  0xdf   :  { %v95_v17 = vmax.f32 %v91_v14, %v94_v16 }
  0xe1   :  { %335 = vmatmul.mubr.msk.f32.vlgmr.msra.gmra.mrb[0].mxu1 %vm105_vm2, %v95_v17 }
 0x1b4   :  { %v175_v25 = vpop.f32.mrb[0].mxu1 }
 0x1b5   :  { %v176_v26 = vadd.f32 %v299_v24, %v175_v25  ;;  %v336_v27 = vpop.f32.mrb[1].mxu1 }
 0x1b7   :  { %v179_v28 = vmul.f32 0.01, %v176_v26 }
 0x1b9   :  { %v180_v29 = vmax.f32 %v176_v26, %v179_v28 }
 0x1bb   :  { %346 = vmatmul.mubr.msk.f32.vlgmr.msra.gmra.mrb[2].mxu0 %vm105_vm2, %v180_v29 }
 0x28e   :  { %v261_v31 = vpop.f32.mrb[2].mxu0 }
 0x28f   :  { %v262_v32 = vadd.f32 %v301_v30, %v261_v31  ;;  %v347_v33 = vpop.f32.mrb[3].mxu0 }
 0x291   :  { %v303_v34 = vmul.f32 -1.442695, %v262_v32 }
 0x293   :  { %367 = vpow2.f32 %v303_v34 }
 0x29d   :  { %v368_v35 = vpop.eup %367 }
 0x29e   :  { %v268_v36 = vadd.f32 1.0, %v368_v35 }
 0x2a0   :  { %369 = vrcp.f32 %v268_v36 }
 0x2aa   :  { %v370_v38 = vpop.eup %369 }
 0x2ab   :  { %v275_v40 = vmul.f32 %v370_v38, %v304_v37 }
 0x2ad   :  { %v280_v41 = vadd.f32 %v305_v39, %v275_v40 }
 0x2af   :  { %282 = vst.msk [vmem:[#allocation2] sm:$0x3] %vm281_vm3, %v280_v41 }
 0x2b0   :  { %382 = shalt.err (!%p379_p4)
}
 0x2b1   :  { %s383_s17 = scalar_lea.hbm %s478_s2, 32 }
 0x2b2   :  { %p384_p5 = scmp.ne.s32.totalorder %s478_s2, %s383_s17  ;;  %p387_p6 = scmp.lt.u32.totalorder %s383_s17, %s478_s2 }
 0x2b4   :  { %p389_p7 = pnand %p387_p6, %p384_p5 }
 0x2b6   :  { %392 = shalt.err (!%p389_p7)
}
 0x2b7   :  { %292 = dma.vmem_to_hbm [thread:$0]  %s290_s13, 32, %s478_s2, [#allocation3]  }
 0x2b8   :  { %393 = dma.done.wait [#allocation3], 32  }
 0x2b9   :  { %394 = vsyncadd [#allocation3], 4294967264 }
 0x2ba   :  { %296 = vsyncpa [#allocation3], 1 }

</bundles_post_ra>
